<compile_context>
chip_gen: v7x
topology: tpu7x:2x2x1
jax: 0.10.0
libtpu: 0.0.40
codegen_flags: <defaults>
</compile_context>

<pallas_src>
import math

import jax
import jax.numpy as jnp
from jax.experimental import pallas as pl
from jax.experimental.pallas import tpu as pltpu


def _pair(v):
    if isinstance(v, (tuple, list)):
        return int(v[0]), int(v[1])
    return int(v), int(v)


def _round_up(n: int, m: int) -> int:
    return ((n + m - 1) // m) * m


def _dct_matrix(n: int) -> jnp.ndarray:
    """Ortho-normalized DCT-II matrix C[k, m] = s_k * cos(pi * (m + 0.5) * k / n)."""
    m = jnp.arange(n, dtype=jnp.float32)[None, :]
    k = jnp.arange(n, dtype=jnp.float32)[:, None]
    c = jnp.cos(jnp.pi * (m + 0.5) * k / n)
    scale = jnp.where(k == 0, jnp.sqrt(1.0 / n), jnp.sqrt(2.0 / n))
    return (c * scale).astype(jnp.float32)


def _cosine_pool_kernel(mt_ref, x_ref, o_ref):
    # mt_ref: (H*W, h*w)  -- fused DCT->crop->IDCT operator (resident, shared)
    # x_ref : (TB,  H*W)  -- TB flattened (H, W) slices
    # o_ref : (TB,  h*w)
    o_ref[...] = jnp.dot(
        x_ref[...], mt_ref[...], preferred_element_type=jnp.float32
    ).astype(o_ref.dtype)


def cosine_pool_2d(x: jnp.ndarray, pool_size) -> jnp.ndarray:
    """x: (N, C, H, W)  ->  (N, C, h, w). Output dtype matches input dtype."""
    h, w = _pair(pool_size)
    N, C, H, W = x.shape
    NC = N * C
    dtype = x.dtype

    # ---- build the fused spectral-pooling operator (plain JAX glue, f32) ----
    C_H = _dct_matrix(H)               # (H, H)
    C_W = _dct_matrix(W)               # (W, W)
    C_h = _dct_matrix(h)               # (h, h)
    C_w = _dct_matrix(w)               # (w, w)
    A = C_h.T @ C_H[:h, :]             # (h, H)
    B = C_W[:w, :].T @ C_w             # (W, w)
    # out[i, j] = sum_{k,l} A[i,k] X[k,l] B[l,j]  ==>  M = kron(A, B.T)
    Mt = jnp.kron(A, B.T).T.astype(dtype)          # (H*W, h*w)

    # ---- batch many slices per grid step (amortize per-step overhead) ----
    x2d = x.reshape(NC, H * W)
    TB = min(256, _round_up(NC, 8))                # multiple of 8 sublanes
    NC_pad = _round_up(NC, TB)
    if NC_pad != NC:
        x2d = jnp.pad(x2d, ((0, NC_pad - NC), (0, 0)))

    out2d = pl.pallas_call(
        _cosine_pool_kernel,
        out_shape=jax.ShapeDtypeStruct((NC_pad, h * w), dtype),
        grid_spec=pltpu.PrefetchScalarGridSpec(
            num_scalar_prefetch=0,
            grid=(NC_pad // TB,),
            in_specs=[
                pl.BlockSpec((H * W, h * w), lambda i: (0, 0)),   # operator (resident)
                pl.BlockSpec((TB, H * W), lambda i: (i, 0)),      # batch of slices
            ],
            out_specs=pl.BlockSpec((TB, h * w), lambda i: (i, 0)),
        ),
        compiler_params=pltpu.CompilerParams(
            dimension_semantics=("parallel",)),
    )(Mt, x2d)

    return out2d[:NC].reshape(N, C, h, w)


def _reference(x, pool_size):
    """Pure-JAX reference: explicit DCT-II -> crop -> DCT-III (ortho) per axis."""
    h, w = _pair(pool_size)
    N, C, H, W = x.shape
    C_H = _dct_matrix(H)
    C_W = _dct_matrix(W)
    C_h = _dct_matrix(h)
    C_w = _dct_matrix(w)
    xf = x.astype(jnp.float32)
    # forward DCT-II (ortho) over width then height: Y = C_H @ X @ C_W.T
    y = jnp.einsum('bchw,kw->bchk', xf, C_W)
    y = jnp.einsum('bchk,mh->bcmk', y, C_H)
    # low-frequency crop
    y = y[..., :h, :w]
    # inverse (DCT-III ortho) over width then height: out = C_h.T @ Y @ C_w
    z = jnp.einsum('bcmk,kj->bcmj', y, C_w)
    z = jnp.einsum('bcmj,mi->bcij', z, C_h)
    return z.astype(x.dtype)


if __name__ == "__main__":
    key = jax.random.PRNGKey(0)
    N, C, H, W = 2, 4, 16, 16
    pool_size = 8
    x = jax.random.normal(key, (N, C, H, W), dtype=jnp.float32)

    out = cosine_pool_2d(x, pool_size)
    out = jax.block_until_ready(out)

    ref = _reference(x, pool_size)
    assert out.shape == (N, C, pool_size, pool_size), out.shape
    err = float(jnp.max(jnp.abs(out - ref)))
    assert err < 1e-3, err

    print("KERNEL_OK")
</pallas_src>

<mosaic_0001>
module attributes {stable_mosaic.version = 11 : i64} {
  func.func @_cosine_pool_kernel(%arg0: i32, %arg1: memref<256x64xf32, #tpu.memory_space<vmem>>, %arg2: memref<8x256xf32, #tpu.memory_space<vmem>>, %arg3: memref<8x64xf32, #tpu.memory_space<vmem>>) attributes {dimension_semantics = [#tpu.dimension_semantics<parallel>], iteration_bounds = array<i64: 1>, scalar_prefetch = 0 : i64, scratch_operands = 0 : i64, tpu.core_type = #tpu.core_type<tc>, window_params = [{pipeline_mode = #tpu.pipeline_mode<synchronous>, transform_indices = @transform_0, window_bounds = array<i64: 256, 64>}, {transform_indices = @transform_1, window_bounds = array<i64: 8, 256>}, {transform_indices = @transform_2, window_bounds = array<i64: 8, 64>}]} {
    %c0 = arith.constant 0 : index
    %c0_0 = arith.constant 0 : index
    %0 = vector.load %arg2[%c0, %c0_0] : memref<8x256xf32, #tpu.memory_space<vmem>>, vector<8x256xf32>
    %c0_1 = arith.constant 0 : index
    %c0_2 = arith.constant 0 : index
    %1 = vector.load %arg1[%c0_1, %c0_2] : memref<256x64xf32, #tpu.memory_space<vmem>>, vector<256x64xf32>
    %cst = arith.constant dense<0.000000e+00> : vector<8x64xf32>
    %2 = tpu.matmul %0, %1, %cst {dimension_numbers = #tpu.dot_dimension_numbers<[1], [0], [0], [1], [0, 0, 1, 1], [], []>} : vector<8x256xf32>, vector<256x64xf32>, vector<8x64xf32> -> vector<8x64xf32>
    %c0_3 = arith.constant 0 : index
    %c0_4 = arith.constant 0 : index
    %3 = vector.load %arg3[%c0_3, %c0_4] : memref<8x64xf32, #tpu.memory_space<vmem>>, vector<8x64xf32>
    tpu.vector_store %arg3[%c0_3, %c0_4], %2 {strides = array<i32>} : memref<8x64xf32, #tpu.memory_space<vmem>>, vector<8x64xf32>,
    return
  }
  func.func @transform_0(%arg0: i32) -> (i32, i32) {
    %c0_i32 = arith.constant 0 : i32
    %c0_i32_0 = arith.constant 0 : i32
    %c0_i32_1 = arith.constant 0 : i32
    return %c0_i32, %c0_i32_0 : i32, i32
  }
  func.func @transform_1(%arg0: i32) -> (i32, i32) {
    %c0_i32 = arith.constant 0 : i32
    %c0_i32_0 = arith.constant 0 : i32
    return %arg0, %c0_i32 : i32, i32
  }
  func.func @transform_2(%arg0: i32) -> (i32, i32) {
    %c0_i32 = arith.constant 0 : i32
    %c0_i32_0 = arith.constant 0 : i32
    return %arg0, %c0_i32 : i32, i32
  }
}

</mosaic_0001>

<bundles_post_ra>
// kernel: tpu_custom_call.1
= control target key start
LH: loop header
LB: loop body
LE: loop exit
PB: predicated region body
PF: predicated region fallthrough
CT: control target
= control target key end

     0   :  { %s354_s0 = inlined_call_operand.vmem [shape: f32[256,64], index: 0, kind: input, shape index: {}]   ;;  %s355_s1 = inlined_call_operand.vmem [shape: f32[8,256], index: 1, kind: input, shape index: {}]   ;;  %s356_s2 = inlined_call_operand.hbm [shape: f32[8,64], index: 2, kind: output, shape index: {}]  }
   0x1   :  { %v30_v0 = vld [vmem:[%s354_s0 + $0x80] sm:$0xff]  ;;  %v31_v1 = vld [vmem:[%s354_s0 + $0x88] sm:$0xff]  ;;  %v32_v5 = vld [vmem:[%s354_s0 + $0x90] sm:$0xff] }
   0x2   :  { %v14_v2 = vld [vmem:[%s354_s0] sm:$0xff]  ;;  %v167_v3 = vpack.c.bf16 %v31_v1, %v30_v0  ;;  %v15_v4 = vld [vmem:[%s354_s0 + $0x8] sm:$0xff]  ;;  %v33_v6 = vld [vmem:[%s354_s0 + $0x98] sm:$0xff] }
   0x3   :  { %v169_v7 = vpack.c.bf16 %v15_v4, %v14_v2  ;;  %v171_v8 = vpack.c.bf16 %v33_v6, %v32_v5  ;;  %v16_v9 = vld [vmem:[%s354_s0 + $0x10] sm:$0xff]  ;;  %v17_v10 = vld [vmem:[%s354_s0 + $0x18] sm:$0xff]  ;;  %v34_v11 = vld [vmem:[%s354_s0 + $0xa0] sm:$0xff] }
   0x4   :  { %168 = vmatprep.subr.bf16.mxu0 %v167_v3  ;;  %v35_v12 = vld [vmem:[%s354_s0 + $0xa8] sm:$0xff]  ;;  %v173_v13 = vpack.c.bf16 %v17_v10, %v16_v9  ;;  %v18_v15 = vld [vmem:[%s354_s0 + $0x20] sm:$0xff]  ;;  %v36_v17 = vld [vmem:[%s354_s0 + $0xb0] sm:$0xff] }
   0x5   :  { %170 = vmatpush3.bf16.msra.mxu0 %v169_v7  ;;  %v175_v14 = vpack.c.bf16 %v35_v12, %v34_v11  ;;  %v19_v16 = vld [vmem:[%s354_s0 + $0x28] sm:$0xff]  ;;  %v37_v18 = vld [vmem:[%s354_s0 + $0xb8] sm:$0xff]  ;;  %v20_v21 = vld [vmem:[%s354_s0 + $0x30] sm:$0xff] }
   0x6   :  { %172 = vmatprep.subr.bf16.mxu0 %v171_v8  ;;  %v177_v19 = vpack.c.bf16 %v19_v16, %v18_v15  ;;  %v179_v20 = vpack.c.bf16 %v37_v18, %v36_v17  ;;  %v21_v22 = vld [vmem:[%s354_s0 + $0x38] sm:$0xff]  ;;  %v38_v23 = vld [vmem:[%s354_s0 + $0xc0] sm:$0xff]  ;;  %v39_v24 = vld [vmem:[%s354_s0 + $0xc8] sm:$0xff] }
   0x7   :  { %v13_v25 = vld [vmem:[%s355_s1 + $0x8] sm:$0xff] }
   0x8   :  { %110 = vmatprep.mubr.f32.mxu0 %v13_v25 }
   0x9   :  { %174 = vmatpush3.bf16.msra.mxu0 %v173_v13 }
   0xa   :  { %176 = vmatprep.subr.bf16.mxu0 %v175_v14 }
   0xb   :  { %7 = vsyncpa [#allocation3], 0  ;;  %v181_v26 = vpack.c.bf16 %v21_v22, %v20_v21  ;;  %v183_v27 = vpack.c.bf16 %v39_v24, %v38_v23  ;;  %v22_v28 = vld [vmem:[%s354_s0 + $0x40] sm:$0xff]  ;;  %v23_v29 = vld [vmem:[%s354_s0 + $0x48] sm:$0xff]  ;;  %s224_s21 = smov [#allocation2]   ;;  %vm116_vm0 = vcmask 523264  }
   0xc   :  { %v40_v30 = vld [vmem:[%s354_s0 + $0xd0] sm:$0xff]  ;;  %v41_v31 = vld [vmem:[%s354_s0 + $0xd8] sm:$0xff]  ;;  %v185_v32 = vpack.c.bf16 %v23_v29, %v22_v28  ;;  %v42_v36 = vld [vmem:[%s354_s0 + $0xe0] sm:$0xff]  ;;  %s124_s22 = sshll.u32 %s224_s21, 4  ;;  %s125_s22 = int_to_ptr.vmem [resolvable:$true] %s124_s22 }
   0xd   :  { %178 = vmatpush3.bf16.msra.mxu0 %v177_v19  ;;  %v187_v33 = vpack.c.bf16 %v41_v31, %v40_v30  ;;  %v24_v34 = vld [vmem:[%s354_s0 + $0x50] sm:$0xff]  ;;  %v25_v35 = vld [vmem:[%s354_s0 + $0x58] sm:$0xff]  ;;  %v43_v37 = vld [vmem:[%s354_s0 + $0xe8] sm:$0xff]  ;;  %s200_s23 = scalar_lea.vmem %s125_s22, 128  ;;  %p205_p1 = scmp.lt.s32.totalorder %s125_s22, %s125_s22 }
   0xe   :  { %180 = vmatprep.subr.bf16.mxu0 %v179_v20  ;;  %v189_v38 = vpack.c.bf16 %v25_v35, %v24_v34  ;;  %v191_v39 = vpack.c.bf16 %v43_v37, %v42_v36  ;;  %v26_v40 = vld [vmem:[%s354_s0 + $0x60] sm:$0xff]  ;;  %v27_v41 = vld [vmem:[%s354_s0 + $0x68] sm:$0xff]  ;;  %v44_v42 = vld [vmem:[%s354_s0 + $0xf0] sm:$0xff]  ;;  %p201_p0 = scmp.ne.s32.totalorder %s125_s22, %s200_s23  ;;  %p206_p2 = scmp.lt.s32.totalorder %s200_s23, %s200_s23 }
   0xf   :  { %v45_v43 = vld [vmem:[%s354_s0 + $0xf8] sm:$0xff]  ;;  %v193_v44 = vpack.c.bf16 %v27_v41, %v26_v40  ;;  %v28_v46 = vld [vmem:[%s354_s0 + $0x70] sm:$0xff]  ;;  %v12_v49 = vld [vmem:[%s355_s1] sm:$0xff] }
  0x10   :  { %v195_v45 = vpack.c.bf16 %v45_v43, %v44_v42  ;;  %v29_v47 = vld [vmem:[%s354_s0 + $0x78] sm:$0xff]  ;;  %p207_p3 = por %p206_p2, %p205_p1 }
  0x11   :  { %182 = vmatpush3.bf16.msra.mxu0 %v181_v26  ;;  %v197_v48 = vpack.c.bf16 %v29_v47, %v28_v46 }
  0x12   :  { %184 = vmatprep.subr.bf16.mxu0 %v183_v27  ;;  %p208_p4 = pnand %p207_p3, %p201_p0 }
  0x15   :  { %186 = vmatpush3.bf16.msra.mxu0 %v185_v32 }
  0x16   :  { %188 = vmatprep.subr.bf16.mxu0 %v187_v33 }
  0x19   :  { %190 = vmatpush3.bf16.msra.mxu0 %v189_v38 }
  0x1a   :  { %192 = vmatprep.subr.bf16.mxu0 %v191_v39 }
  0x1d   :  { %194 = vmatpush3.bf16.msra.mxu0 %v193_v44 }
  0x1e   :  { %196 = vmatprep.subr.bf16.mxu0 %v195_v45 }
  0x21   :  { %198 = vmatpush3.bf16.msra.mxu0 %v197_v48 }
  0x24   :  { %111 = vmatmul.mubr.f32.vlgmr.msra.gmra.mrb[0].mxu0 %v12_v49 }
  0xf7   :  { %v164_v50 = vpop.f32.mrb[0].mxu0 }
  0xf8   :  { %v165_v51 = vpop.f32.mrb[1].mxu0 }
  0xf9   :  { %v166_v52 = vadd.f32 %v165_v51, %v164_v50 }
  0xfb   :  { %117 = vst.msk [vmem:[#allocation2] sm:$0xff] %vm116_vm0, %v166_v52 }
  0xfc   :  { %211 = shalt.err (!%p208_p4)
}
  0xfd   :  { %s212_s1 = scalar_lea.hbm %s356_s2, 128 }
  0xfe   :  { %p213_p5 = scmp.ne.s32.totalorder %s356_s2, %s212_s1  ;;  %p216_p6 = scmp.lt.u32.totalorder %s212_s1, %s356_s2 }
 0x100   :  { %p218_p7 = pnand %p216_p6, %p213_p5 }
 0x102   :  { %221 = shalt.err (!%p218_p7)
}
 0x103   :  { %127 = dma.vmem_to_hbm [thread:$0]  %s125_s22, 128, %s356_s2, [#allocation3]  }
 0x104   :  { %222 = dma.done.wait [#allocation3], 128  }
 0x105   :  { %223 = vsyncadd [#allocation3], 4294967168 }
 0x106   :  { %131 = vsyncpa [#allocation3], 1 }

</bundles_post_ra>
